<compile_context>
chip_gen: v6e
topology: v6e:2x2x1
jax: 0.10.0
libtpu: 0.0.40
codegen_flags: <defaults>
</compile_context>

<pallas_src>
import jax
import jax.numpy as jnp
from jax.experimental import pallas as pl
from jax.experimental.pallas import tpu as pltpu  # noqa: F401  (kept for parity with other kernels)


# ----------------------------------------------------------------------------
# Zero-copy aliased pass-through (default forward path).
# ----------------------------------------------------------------------------
def _passthrough_kernel(x_hbm_ref, o_hbm_ref):
    # MyImage.forward() is the identity on the stored parameter.  The output
    # HBM buffer is aliased to the input HBM buffer, so the data is already in
    # place — no DMA, no compute.
    del x_hbm_ref, o_hbm_ref


def _passthrough_pallas(image_param: jax.Array) -> jax.Array:
    return pl.pallas_call(
        _passthrough_kernel,
        out_shape=jax.ShapeDtypeStruct(image_param.shape, image_param.dtype),
        in_specs=[pl.BlockSpec(memory_space=pl.ANY)],   # raw HBM ref, no auto-DMA
        out_specs=pl.BlockSpec(memory_space=pl.ANY),    # output lives in HBM too
        input_output_aliases={0: 0},                    # out buffer == in buffer
    )(image_param)


@jax.custom_vjp
def my_image_forward(image_param: jax.Array) -> jax.Array:
    """Pallas equivalent of MyImage.forward(): returns the stored image tensor.

    Differentiable: gradient w.r.t. the parameter is the identity (cotangent
    passes straight through), matching PyTorch autograd on `return self.data`.
    """
    return _passthrough_pallas(image_param)


def _my_image_forward_fwd(image_param):
    return _passthrough_pallas(image_param), None


def _my_image_forward_bwd(_, g):
    return (g,)


my_image_forward.defvjp(_my_image_forward_fwd, _my_image_forward_bwd)


# Non-donating wrapper: correct everywhere, but XLA inserts a defensive copy
# to honor the alias (input stays usable by the caller).
my_image_forward_jit = jax.jit(my_image_forward)

# Donating wrapper: true zero-copy pass-through (input buffer is consumed and
# re-used as the output buffer).  Preferred when the caller does not need the
# original array object afterwards.
my_image_forward_jit_donated = jax.jit(my_image_forward, donate_argnums=(0,))


# ----------------------------------------------------------------------------
# Materializing copy variant (grid-free single VMEM round trip).
# ----------------------------------------------------------------------------
def _copy_kernel(x_ref, o_ref):
    o_ref[...] = x_ref[...]


def my_image_forward_copy(image_param: jax.Array) -> jax.Array:
    """Identity that actually writes a fresh output buffer.

    Reshapes to a lane-dense 2D view and does a single whole-array
    HBM->VMEM->HBM round trip with no grid (no per-step pipeline overhead).
    The full-array block sidesteps the (8,128) divisibility rule; the tensor
    (sub-MiB) comfortably fits scoped VMEM on v5e/v6e/v7x.
    """
    n, c, h, w = image_param.shape
    x2d = image_param.reshape(n * c * h, w)  # metadata-only reshape under jit
    out2d = pl.pallas_call(
        _copy_kernel,
        out_shape=jax.ShapeDtypeStruct(x2d.shape, x2d.dtype),
        # No grid / no BlockSpecs: whole array staged in VMEM by default.
    )(x2d)
    return out2d.reshape(image_param.shape)


my_image_forward_copy_jit = jax.jit(my_image_forward_copy)


if __name__ == "__main__":
    key = jax.random.PRNGKey(0)
    # Small shape consistent with the module (N, C, H, W); last dim lane-dense.
    shape = (1, 3, 32, 128)

    # 1) Zeros parameter (matches MyImage.__init__), non-donating path.
    image_param = jnp.zeros(shape, dtype=jnp.float32)
    out = jax.block_until_ready(my_image_forward_jit(image_param))
    assert out.shape == shape
    assert out.dtype == jnp.float32
    assert bool(jnp.array_equal(out, image_param))

    # 2) Random parameter, donating (true zero-copy) path.  Compare against a
    #    separately-retained buffer since the donated one is consumed.
    rand_param = jax.random.normal(key, shape, dtype=jnp.float32)
    donated_in = rand_param + 0.0  # fresh device buffer to donate
    out_donated = jax.block_until_ready(my_image_forward_jit_donated(donated_in))
    assert bool(jnp.array_equal(out_donated, rand_param))

    # 3) Gradient through the Pallas forward (custom_vjp identity).
    grad = jax.grad(lambda p: jnp.sum(my_image_forward(p)))(rand_param)
    grad = jax.block_until_ready(grad)
    assert bool(jnp.array_equal(grad, jnp.ones(shape, jnp.float32)))

    # 4) Materializing copy variant writes a real output buffer.
    out_copy = jax.block_until_ready(my_image_forward_copy_jit(rand_param))
    assert bool(jnp.array_equal(out_copy, rand_param))

    print("KERNEL_OK")
</pallas_src>

<mosaic_0001>
module attributes {stable_mosaic.version = 11 : i64} {
  func.func @_passthrough_kernel(%arg0: memref<1x3x32x128xf32, #tpu.memory_space<any>>, %arg1: memref<1x3x32x128xf32, #tpu.memory_space<any>>) attributes {dimension_semantics = [], scalar_prefetch = 0 : i64, scratch_operands = 0 : i64, tpu.core_type = #tpu.core_type<tc>} {
    return
  }
}

</mosaic_0001>

<bundles_post_ra>
// kernel: my_image_forward.1
= control target key start
LH: loop header
LB: loop body
LE: loop exit
PB: predicated region body
PF: predicated region fallthrough
CT: control target
= control target key end

     0   :  { %s16_s0 = inlined_call_operand.hbm [shape: f32[1,3,32,128], index: 0, kind: input, shape index: {}, may-alias: {0,1}]   ;;  %s17_s1 = inlined_call_operand.hbm [shape: f32[1,3,32,128], index: 1, kind: output, shape index: {}, may-alias: {0,1}]  }

</bundles_post_ra>
